<compile_context>
chip_gen: v6e
topology: v6e:2x2x1
jax: 0.10.0
libtpu: 0.0.40
codegen_flags: <defaults>
</compile_context>

<pallas_src>
import numpy as np
import jax
import jax.numpy as jnp
from jax.experimental import pallas as pl
from jax.experimental.pallas import tpu as pltpu

_HALF_PI = float(0.5 * np.pi)
# Cephes single-precision minimax coefficients for sin/cos on [-pi/4, pi/4].
_S0, _S1, _S2 = -1.9515295891e-4, 8.3321608736e-3, -1.6666654611e-1
_C0, _C1, _C2 = 2.443315711809948e-5, -1.388731625493765e-3, 4.166664568298827e-2


def _make_gff_kernel(mapping_size, mc):
    """Kernel over one (c_pad, tp) input tile -> one (2M, tp) [sin; cos] tile."""
    n_chunks = mapping_size // mc

    def kernel(x_ref, bt_ref, out_ref):
        # x_ref:  (c_pad, tp)   one batch's pixel tile, channels-major
        # bt_ref: (M, c_pad)    4 * Bmat^T  (quarter-turn units)
        # out_ref:(2M, tp)      rows [0:M] = sin, rows [M:2M] = cos
        x = x_ref[...].astype(jnp.float32)

        def chunk(i, carry):
            r0 = pl.multiple_of(i * mc, mc)
            bq = bt_ref[pl.ds(r0, mc), :]                                  # (mc, c_pad)
            u = jnp.dot(bq, x, preferred_element_type=jnp.float32)        # (mc, tp)

            # Shared sin/cos range reduction in the quarter-turn domain.
            # k = round(u) and f = u - k are exact in f32 (Sterbenz), so the
            # quadrant decomposition sin(2*pi*t) = sin(pi/2*(k + f)) is exact.
            k = jnp.floor(u + 0.5)
            f = u - k                                                      # |f| <= 0.5
            q = k.astype(jnp.int32) & 3                                    # quadrant
            theta = f * _HALF_PI                                           # |theta| <= pi/4
            z = theta * theta
            sin_p = ((_S0 * z + _S1) * z + _S2) * z * theta + theta
            cos_p = ((_C0 * z + _C1) * z + _C2) * (z * z) - 0.5 * z + 1.0

            # quadrant 0: ( sin,  cos)   1: ( cos, -sin)
            # quadrant 2: (-sin, -cos)   3: (-cos,  sin)
            swap = (q & 1) == 1
            s_val = jnp.where(swap, cos_p, sin_p)
            c_val = jnp.where(swap, sin_p, cos_p)
            s_out = jnp.where((q & 2) == 2, -s_val, s_val)
            c_out = jnp.where(((q + 1) & 2) == 2, -c_val, c_val)

            c_start = pl.multiple_of(i * mc + mapping_size, mc)
            out_ref[pl.ds(r0, mc), :] = s_out.astype(out_ref.dtype)
            out_ref[pl.ds(c_start, mc), :] = c_out.astype(out_ref.dtype)
            return carry

        jax.lax.fori_loop(0, n_chunks, chunk, 0)

    return kernel


def gaussian_fourier_feature_transform(x, Bmat, *, out_dtype=None, tp=None):
    """x: (B, C, W, H), Bmat: (C, M). Returns (B, 2*M, W, H)."""
    batches, channels, width, height = x.shape
    c_b, mapping_size = Bmat.shape
    assert channels == c_b, "channel mismatch"
    n_pix = width * height
    out_dtype = jnp.dtype(out_dtype) if out_dtype is not None else x.dtype

    # sin(2*pi*t), t = x@B  ==  sin((pi/2)*u), u = x@(4*B).  4 is a power of two so
    # folding it into the projection matrix is exact and the in-kernel range
    # reduction stays exact.
    bt = 4.0 * jnp.asarray(Bmat, jnp.float32).T                    # (M, C)

    # Pad channels to a multiple of 8 (f32 sublane tile): tiny zero-pad, keeps the
    # projection on the MXU with unmasked, aligned tiles.
    c_pad = max(8, ((channels + 7) // 8) * 8)
    x_flat = x.reshape(batches, channels, n_pix)
    if c_pad != channels:
        bt = jnp.pad(bt, ((0, 0), (0, c_pad - channels)))
        x_flat = jnp.pad(x_flat, ((0, 0), (0, c_pad - channels), (0, 0)))

    # Pad the pixel axis to a multiple of 128 (lane tile) so every tile is lane
    # dense and arbitrary W*H never forces a giant fallback block; padded pixels
    # are sliced off after the kernel.
    n_pix_pad = ((n_pix + 127) // 128) * 128
    if n_pix_pad != n_pix:
        x_flat = jnp.pad(x_flat, ((0, 0), (0, 0), (0, n_pix_pad - n_pix)))

    # In-kernel M chunk size: bounds live (mc, tp) intermediates.
    mc = mapping_size
    for cand in (128, 64, 32, 16, 8):
        if mapping_size % cand == 0:
            mc = cand
            break

    # Generation-aware tiling: query VMEM capacity (64 MiB/TC on v7x, 128 MiB on
    # v5e/v6e) and pick the largest pixel tile whose double-buffered blocks plus
    # intermediates fit, preferring >= 4 grid steps so both v7x TCs stay busy.
    try:
        vmem_cap = int(pltpu.get_tpu_info().vmem_capacity_bytes)
    except Exception:
        vmem_cap = 64 << 20  # conservative fallback (v7x per-TC VMEM)

    x_bytes = jnp.dtype(x_flat.dtype).itemsize
    o_bytes = jnp.dtype(out_dtype).itemsize

    def step_bytes(tp_):
        return (2 * c_pad * tp_ * x_bytes                    # x block, double-buffered
                + 2 * (2 * mapping_size) * tp_ * o_bytes     # out block, double-buffered
                + 6 * mc * tp_ * 4                           # live per-chunk intermediates
                + 2 * mapping_size * c_pad * 4)              # resident projection matrix

    if tp is None:
        budget = int(0.4 * vmem_cap)
        base = (4096, 3072, 2048, 1536, 1024, 768, 512, 384, 256, 128)
        cands = sorted({c for c in base if c <= n_pix_pad} | {n_pix_pad})
        fitting = [c for c in cands if n_pix_pad % c == 0 and step_bytes(c) <= budget]
        if not fitting:
            fitting = [128]
        pref = [c for c in fitting if batches * (n_pix_pad // c) >= 4]
        tp = max(pref) if pref else max(fitting)
    assert n_pix_pad % tp == 0, "pixel tile must divide the padded pixel count"

    grid = (batches, n_pix_pad // tp)
    vmem_limit = max(32 << 20,
                     min(int(0.75 * vmem_cap), 2 * step_bytes(tp) + (8 << 20)))

    cost = pl.CostEstimate(
        flops=(2 * batches * mapping_size * n_pix_pad * c_pad
               + 30 * batches * mapping_size * n_pix_pad),
        transcendentals=2 * batches * mapping_size * n_pix_pad,
        bytes_accessed=(batches * n_pix_pad * c_pad * x_bytes
                        + batches * 2 * mapping_size * n_pix_pad * o_bytes
                        + mapping_size * c_pad * 4),
    )

    out_flat = pl.pallas_call(
        _make_gff_kernel(mapping_size, mc),
        out_shape=jax.ShapeDtypeStruct((batches, 2 * mapping_size, n_pix_pad), out_dtype),
        grid_spec=pltpu.PrefetchScalarGridSpec(
            num_scalar_prefetch=0,
            grid=grid,
            in_specs=[
                # batch dim squeezed out of the kernel view
                pl.BlockSpec((None, c_pad, tp), lambda b, j: (b, 0, j)),
                # projection matrix stays resident in VMEM across the whole grid
                pl.BlockSpec((mapping_size, c_pad), lambda b, j: (0, 0)),
            ],
            out_specs=pl.BlockSpec((None, 2 * mapping_size, tp), lambda b, j: (b, 0, j)),
        ),
        compiler_params=pltpu.CompilerParams(
            dimension_semantics=("parallel", "parallel"),
            vmem_limit_bytes=int(vmem_limit),
        ),
        cost_estimate=cost,
    )(x_flat, bt)

    if n_pix_pad != n_pix:
        out_flat = out_flat[:, :, :n_pix]
    # (B, 2M, W*H) -> (B, 2M, W, H): pure reshape, no data movement.
    return out_flat.reshape(batches, 2 * mapping_size, width, height)


if __name__ == "__main__":
    key = jax.random.PRNGKey(0)
    kx, kb = jax.random.split(key)

    batch, channels, width, height = 2, 4, 16, 16
    mapping_size, scale = 256, 10.0

    x = jax.random.normal(kx, (batch, channels, width, height), dtype=jnp.float32)
    # deterministic "randn * scale" parameter (the module's self._B)
    Bmat = jax.random.normal(kb, (channels, mapping_size), dtype=jnp.float32) * scale

    out = gaussian_fourier_feature_transform(x, Bmat)
    out = jax.block_until_ready(out)

    # pure-JAX reference mirroring the PyTorch forward exactly
    x_perm = jnp.transpose(x, (0, 2, 3, 1)).reshape(-1, channels)
    proj = x_perm @ Bmat
    proj = jnp.transpose(proj.reshape(batch, width, height, mapping_size), (0, 3, 1, 2))
    proj = 2.0 * np.pi * proj
    ref = jnp.concatenate([jnp.sin(proj), jnp.cos(proj)], axis=1)

    assert out.shape == (batch, 2 * mapping_size, width, height)
    np.testing.assert_allclose(np.asarray(out), np.asarray(ref), atol=2e-3, rtol=2e-3)

    print("KERNEL_OK")
</pallas_src>

<mosaic_0001>
module attributes {stable_mosaic.version = 11 : i64} {
  func.func @kernel(%arg0: i32, %arg1: i32, %arg2: memref<1x8x128xf32, #tpu.memory_space<vmem>>, %arg3: memref<256x8xf32, #tpu.memory_space<vmem>>, %arg4: memref<1x512x128xf32, #tpu.memory_space<vmem>>) attributes {dimension_semantics = [#tpu.dimension_semantics<parallel>, #tpu.dimension_semantics<parallel>], iteration_bounds = array<i64: 2, 2>, scalar_prefetch = 0 : i64, scratch_operands = 0 : i64, tpu.core_type = #tpu.core_type<tc>, window_params = [{transform_indices = @transform_0, window_bounds = array<i64: 1, 8, 128>}, {pipeline_mode = #tpu.pipeline_mode<synchronous>, transform_indices = @transform_1, window_bounds = array<i64: 256, 8>}, {transform_indices = @transform_2, window_bounds = array<i64: 1, 512, 128>}]} {
    %c0 = arith.constant 0 : index
    %c0_0 = arith.constant 0 : index
    %c0_1 = arith.constant 0 : index
    %0 = vector.load %arg2[%c0, %c0_0, %c0_1] : memref<1x8x128xf32, #tpu.memory_space<vmem>>, vector<1x8x128xf32>
    %1 = vector.shape_cast %0 : vector<1x8x128xf32> to vector<8x128xf32>
    %c0_i32 = arith.constant 0 : i32
    %c2_i32 = arith.constant 2 : i32
    %2 = arith.addi %c0_i32, %c2_i32 : i32
    %c1_i32 = arith.constant 1 : i32
    scf.for %arg5 = %c0_i32 to %2 step %c1_i32  : i32 {
      %c128_i32 = arith.constant 128 : i32
      %3 = arith.muli %arg5, %c128_i32 : i32
      %4 = tpu.assume_multiple %3, 128 : i32
      %5 = arith.index_cast %4 : i32 to index
      %c0_3 = arith.constant 0 : index
      %6 = vector.load %arg3[%5, %c0_3] : memref<256x8xf32, #tpu.memory_space<vmem>>, vector<128x8xf32>
      %cst = arith.constant dense<0.000000e+00> : vector<128x128xf32>
      %7 = tpu.matmul %6, %1, %cst {dimension_numbers = #tpu.dot_dimension_numbers<[1], [0], [0], [1], [0, 0, 1, 1], [], []>} : vector<128x8xf32>, vector<8x128xf32>, vector<128x128xf32> -> vector<128x128xf32>
      %cst_4 = arith.constant 5.000000e-01 : f32
      %8 = vector.broadcast %cst_4 : f32 to vector<128x128xf32>
      %9 = arith.addf %7, %8 : vector<128x128xf32>
      %10 = math.floor %9 : vector<128x128xf32>
      %11 = arith.subf %7, %10 : vector<128x128xf32>
      %12 = arith.fptosi %10 : vector<128x128xf32> to vector<128x128xi32>
      %c3_i32 = arith.constant 3 : i32
      %13 = vector.broadcast %c3_i32 : i32 to vector<128x128xi32>
      %14 = arith.andi %12, %13 : vector<128x128xi32>
      %cst_5 = arith.constant 1.57079637 : f32
      %15 = vector.broadcast %cst_5 : f32 to vector<128x128xf32>
      %16 = arith.mulf %11, %15 : vector<128x128xf32>
      %17 = arith.mulf %16, %16 : vector<128x128xf32>
      %cst_6 = arith.constant -1.95152956E-4 : f32
      %18 = vector.broadcast %cst_6 : f32 to vector<128x128xf32>
      %19 = arith.mulf %18, %17 : vector<128x128xf32>
      %cst_7 = arith.constant 0.00833216123 : f32
      %20 = vector.broadcast %cst_7 : f32 to vector<128x128xf32>
      %21 = arith.addf %19, %20 : vector<128x128xf32>
      %22 = arith.mulf %21, %17 : vector<128x128xf32>
      %cst_8 = arith.constant -0.166666552 : f32
      %23 = vector.broadcast %cst_8 : f32 to vector<128x128xf32>
      %24 = arith.addf %22, %23 : vector<128x128xf32>
      %25 = arith.mulf %24, %17 : vector<128x128xf32>
      %26 = arith.mulf %25, %16 : vector<128x128xf32>
      %27 = arith.addf %26, %16 : vector<128x128xf32>
      %cst_9 = arith.constant 2.44331568E-5 : f32
      %28 = vector.broadcast %cst_9 : f32 to vector<128x128xf32>
      %29 = arith.mulf %28, %17 : vector<128x128xf32>
      %cst_10 = arith.constant -0.00138873165 : f32
      %30 = vector.broadcast %cst_10 : f32 to vector<128x128xf32>
      %31 = arith.addf %29, %30 : vector<128x128xf32>
      %32 = arith.mulf %31, %17 : vector<128x128xf32>
      %cst_11 = arith.constant 0.0416666456 : f32
      %33 = vector.broadcast %cst_11 : f32 to vector<128x128xf32>
      %34 = arith.addf %32, %33 : vector<128x128xf32>
      %35 = arith.mulf %17, %17 : vector<128x128xf32>
      %36 = arith.mulf %34, %35 : vector<128x128xf32>
      %cst_12 = arith.constant 5.000000e-01 : f32
      %37 = vector.broadcast %cst_12 : f32 to vector<128x128xf32>
      %38 = arith.mulf %37, %17 : vector<128x128xf32>
      %39 = arith.subf %36, %38 : vector<128x128xf32>
      %cst_13 = arith.constant 1.000000e+00 : f32
      %40 = vector.broadcast %cst_13 : f32 to vector<128x128xf32>
      %41 = arith.addf %39, %40 : vector<128x128xf32>
      %c1_i32_14 = arith.constant 1 : i32
      %42 = vector.broadcast %c1_i32_14 : i32 to vector<128x128xi32>
      %43 = arith.andi %14, %42 : vector<128x128xi32>
      %c1_i32_15 = arith.constant 1 : i32
      %44 = vector.broadcast %c1_i32_15 : i32 to vector<128x128xi32>
      %45 = arith.cmpi eq, %43, %44 : vector<128x128xi32>
      %46 = arith.select %45, %41, %27 : vector<128x128xi1>, vector<128x128xf32>
      %47 = arith.select %45, %27, %41 : vector<128x128xi1>, vector<128x128xf32>
      %c2_i32_16 = arith.constant 2 : i32
      %48 = vector.broadcast %c2_i32_16 : i32 to vector<128x128xi32>
      %49 = arith.andi %14, %48 : vector<128x128xi32>
      %c2_i32_17 = arith.constant 2 : i32
      %50 = vector.broadcast %c2_i32_17 : i32 to vector<128x128xi32>
      %51 = arith.cmpi eq, %49, %50 : vector<128x128xi32>
      %cst_18 = arith.constant 0.000000e+00 : f32
      %52 = vector.broadcast %cst_18 : f32 to vector<128x128xf32>
      %53 = arith.subf %52, %46 : vector<128x128xf32>
      %54 = arith.select %51, %53, %46 : vector<128x128xi1>, vector<128x128xf32>
      %c1_i32_19 = arith.constant 1 : i32
      %55 = vector.broadcast %c1_i32_19 : i32 to vector<128x128xi32>
      %56 = arith.addi %14, %55 : vector<128x128xi32>
      %c2_i32_20 = arith.constant 2 : i32
      %57 = vector.broadcast %c2_i32_20 : i32 to vector<128x128xi32>
      %58 = arith.andi %56, %57 : vector<128x128xi32>
      %c2_i32_21 = arith.constant 2 : i32
      %59 = vector.broadcast %c2_i32_21 : i32 to vector<128x128xi32>
      %60 = arith.cmpi eq, %58, %59 : vector<128x128xi32>
      %cst_22 = arith.constant 0.000000e+00 : f32
      %61 = vector.broadcast %cst_22 : f32 to vector<128x128xf32>
      %62 = arith.subf %61, %47 : vector<128x128xf32>
      %63 = arith.select %60, %62, %47 : vector<128x128xi1>, vector<128x128xf32>
      %c128_i32_23 = arith.constant 128 : i32
      %64 = arith.muli %arg5, %c128_i32_23 : i32
      %c256_i32 = arith.constant 256 : i32
      %65 = arith.addi %64, %c256_i32 : i32
      %66 = tpu.assume_multiple %65, 128 : i32
      %c0_24 = arith.constant 0 : index
      %67 = arith.index_cast %4 : i32 to index
      %c0_25 = arith.constant 0 : index
      %68 = vector.load %arg4[%c0_24, %67, %c0_25] : memref<1x512x128xf32, #tpu.memory_space<vmem>>, vector<1x128x128xf32>
      %69 = vector.shape_cast %68 : vector<1x128x128xf32> to vector<128x128xf32>
      %70 = vector.shape_cast %54 : vector<128x128xf32> to vector<1x128x128xf32>
      tpu.vector_store %arg4[%c0_24, %67, %c0_25], %70 {strides = array<i32>} : memref<1x512x128xf32, #tpu.memory_space<vmem>>, vector<1x128x128xf32>,
      %c0_26 = arith.constant 0 : index
      %71 = arith.index_cast %66 : i32 to index
      %c0_27 = arith.constant 0 : index
      %72 = vector.load %arg4[%c0_26, %71, %c0_27] : memref<1x512x128xf32, #tpu.memory_space<vmem>>, vector<1x128x128xf32>
      %73 = vector.shape_cast %72 : vector<1x128x128xf32> to vector<128x128xf32>
      %74 = vector.shape_cast %63 : vector<128x128xf32> to vector<1x128x128xf32>
      tpu.vector_store %arg4[%c0_26, %71, %c0_27], %74 {strides = array<i32>} : memref<1x512x128xf32, #tpu.memory_space<vmem>>, vector<1x128x128xf32>,
    }
    %c2_i32_2 = arith.constant 2 : i32
    return
  }
  func.func @transform_0(%arg0: i32, %arg1: i32) -> (i32, i32, i32) {
    %c0_i32 = arith.constant 0 : i32
    %c0_i32_0 = arith.constant 0 : i32
    return %arg0, %c0_i32, %arg1 : i32, i32, i32
  }
  func.func @transform_1(%arg0: i32, %arg1: i32) -> (i32, i32) {
    %c0_i32 = arith.constant 0 : i32
    %c0_i32_0 = arith.constant 0 : i32
    %c0_i32_1 = arith.constant 0 : i32
    return %c0_i32, %c0_i32_0 : i32, i32
  }
  func.func @transform_2(%arg0: i32, %arg1: i32) -> (i32, i32, i32) {
    %c0_i32 = arith.constant 0 : i32
    %c0_i32_0 = arith.constant 0 : i32
    return %arg0, %c0_i32, %arg1 : i32, i32, i32
  }
}

</mosaic_0001>

<bundles_post_ra>
// kernel: tpu_custom_call.1
= control target key start
LH: loop header
LB: loop body
LE: loop exit
PB: predicated region body
PF: predicated region fallthrough
CT: control target
= control target key end

     0   :  { %7 = vsyncpa [#allocation3], 0  ;;  %s2040_s0 = inlined_call_operand.vmem [shape: f32[2,8,256], index: 0, kind: input, shape index: {}]   ;;  %s2041_s1 = inlined_call_operand.vmem [shape: f32[256,8], index: 1, kind: input, shape index: {}]   ;;  %s2042_s2 = inlined_call_operand.hbm [shape: f32[2,512,256], index: 2, kind: output, shape index: {}]  }
   0x1   :  { %9 = vsyncpa [#allocation3 + $0x1], 0  ;;  %s1432_s9 = smov 0   ;;  %s1434_s10 = smov 0  }
   0x2   :  { %s1436_s11 = smov 0   ;;  %s1438_s12 = smov 0  }
   0x3   :  { %s1440_s13 = smov 0   ;;  %s1442_s14 = smov 0  }
   0x4   :  { %s1444_s15 = smov 0   ;;  %s1446_s16 = smov 0  }
   0x5 LB: > { %s1105_s17 = sadd.s32 4294967295, %s1407_s16   ;;  %s1106_s18 = sadd.s32 4294967294, %s1407_s16   ;;  %s1407_s16 = sphi %s1446_s16, %s15_s16   ;;  %s1403_s15 = sphi %s1444_s15, %s2127_s15   ;;  %s1399_s14 = sphi %s1442_s14, %s2126_s14   ;;  %s1395_s13 = sphi %s1440_s13, %s2125_s13   ;;  %s1391_s12 = sphi %s1438_s12, %s2124_s12   ;;  %s1387_s11 = sphi %s1436_s11, %s2123_s11   ;;  %s1383_s10 = sphi %s1434_s10, %s2122_s10   ;;  %s1379_s9 = sphi %s1432_s9, %s2121_s9  }
   0x6   : > { %s24_s19 = sadd.s32 1, %s1399_s14  ;;  %s27_s20 = sadd.s32 1, %s1403_s15 }
   0x7   : > { %p25_p0 = scmp.ge.s32.totalorder %s24_s19, 2  ;;  %p95_p1 = scmp.ne.s32.totalorder %s1387_s11, %s1383_s10 }
   0x8   : > { %p96_p2 = scmp.eq.s32.totalorder %s1105_s17, 3  ;;  %p101_p5 = scmp.ne.s32.totalorder %s1383_s10, %s1379_s9 }
   0x9   : > { %s2129_s19 = smov (%p25_p0, %s24_s19), 0  ;;  %s2131_s20 = smov (!%p25_p0, %s27_s20), %s1403_s15 }
   0xa   : > { %s81_s21 = ssub.s32 %s1399_s14, %s2129_s19  ;;  %p1483_p3 = por %p96_p2, %p95_p1 }
   0xb   : > { %p29_p4 = scmp.ge.s32.totalorder %s2131_s20, 2  ;;  %p102_p6 = scmp.eq.s32.totalorder %s1106_s18, 3 }
   0xc   : > { %p1109_p7 = scmp.ge.s32.totalorder %s1407_s16, 1  ;;  %p134_p9 = scmp.lt.s32.totalorder %s1407_s16, 5 }
   0xd   : > { %s2133_s20 = smov (%p29_p4, %s2131_s20), 0  ;;  %p1492_p8 = por %p102_p6, %p101_p5 }
   0xe   : > { %s80_s24 = ssub.s32 %s1403_s15, %s2133_s20  ;;  %s85_s25 = sadd.s32 1, %s1387_s11 }
   0xf   : > { %s82_s26 = sor.u32 %s81_s21, %s80_s24  ;;  %p135_p10 = pnand %p1109_p7, %p134_p9 }
  0x10   : > { %p83_p11 = scmp.eq.s32.totalorder %s82_s26, 0  ;;  %s156_s28 = sand.u32 (!%p135_p10), 1, %s1383_s10  }
  0x11   : > { %138 = sbr.rel (%p135_p10) target bundleno = 397 (0x18d), region = 28  ;;  %p159_p12 = scmp.lt.s32.totalorder (!%p135_p10), %s1395_s13, 1 }
  0x12   : > { %s1501_s27 = scalar_select %p83_p11, %s1387_s11, %s85_s25  }
  0x13   : > { %s1507_s29 = sshll.u32 (!%p135_p10), %s156_s28, 9  ;;  %p161_p13 = scmp.lt.s32.totalorder (!%p135_p10), %s1391_s12, 1 }
  0x14   : > { %s158_s18 = scalar_lea.vmem (!%p135_p10), [#allocation2], %s1507_s29  ;;  %s1518_s21 = smov (!%p135_p10), 0  }
  0x16   : > { %s160_s30 = scalar_select %p159_p12, %s1395_s13, 1 }
  0x17   : > { %s162_s3 = scalar_select %p161_p13, %s1391_s12, 1 }
  0x18   : > { %s1111_s4 = sshll.u32 %s160_s30, 1 }
  0x19   : > { %s164_s5 = sadd.s32 %s1111_s4, %s162_s3 }
  0x1a   : > { %s1112_s6 = sshll.u32 %s164_s5, 3 }
  0x1b   : > { %s166_s17 = scalar_lea.vmem %s2040_s0, %s1112_s6 }
  0x1c   : > { %v1515_v0 = vld [vmem:[%s166_s17] sm:$0xff] }
  0x1d LB: >> { %1169 = vmatprep.subr.mxu0 %v1515_v0  ;;  %1195 = vmatprep.subr.mxu1 %v1515_v0  ;;  %s1113_s24 = sshll.u32 %s1411_s21, 7  ;;  %vm192_vm0 = vcmask 64512   ;;  %s173_s21 = sadd.s32 1, %s1411_s21   ;;  %s1411_s21 = sphi %s1518_s21, %s173_s21  }
  0x1e   : >> { %1170 = vmatpush3.msra.mxu0 %v1515_v0  ;;  %1196 = vmatpush3.msra.mxu1 %v1515_v0  ;;  %s175_s30 = scalar_lea.vmem %s2041_s1, %s1113_s24  ;;  %s1612_s3 = scalar_lea.vmem %s158_s18, %s1113_s24 [#allocation2] }
  0x1f   : >> { %v176_v1 = vld [vmem:[%s175_s30] sm:$0xff]  ;;  %v177_v3 = vld [vmem:[%s175_s30 + $0x8] sm:$0xff]  ;;  %v178_v5 = vld [vmem:[%s175_s30 + $0x10] sm:$0xff]  ;;  %p170_p0 = scmp.ge.s32.totalorder %s173_s21, 2  }
  0x20   : >> { %v184_v2 = vld [vmem:[%s175_s30 + $0x40] sm:$0xff]  ;;  %1171 = vmatprep.mubr.msk.f32.mxu0 %vm192_vm0, %v176_v1  ;;  %v185_v4 = vld [vmem:[%s175_s30 + $0x48] sm:$0xff]  ;;  %v186_v6 = vld [vmem:[%s175_s30 + $0x50] sm:$0xff]  ;;  %s1148_s4 = sshll.u32 (%p170_p0), %s1395_s13, 7  ;;  %s1012_s6 = sshll.u32 (%p170_p0), %s158_s18, 4  ;;  %s1980_s6 = int_to_ptr.vmem [resolvable:$true] %s1012_s6 }
  0x21   : >> { %1183 = vmatprep.mubr.msk.f32.mxu1 %vm192_vm0, %v184_v2  ;;  %1172 = vmatmul.mubr.msk.f32.vlgmr.msra.gmra.mxu0 %vm192_vm0, %v177_v3  ;;  %v179_v7 = vld [vmem:[%s175_s30 + $0x18] sm:$0xff]  ;;  %v180_v9 = vld [vmem:[%s175_s30 + $0x20] sm:$0xff]  ;;  %v181_v11 = vld [vmem:[%s175_s30 + $0x28] sm:$0xff]  ;;  %s1009_s5 = sadd.s32 (%p170_p0), %s1391_s12, %s1148_s4  ;;  %s1989_s24 = scalar_lea.sflag (%p170_p0), [#allocation3], %s156_s28 }
  0x22   : >> { %1184 = vmatmul.mubr.msk.f32.vlgmr.msra.gmra.mxu1 %vm192_vm0, %v185_v4  ;;  %1174 = vmatprep.mubr.msk.f32.mxu0 %vm192_vm0, %v178_v5  ;;  %v187_v8 = vld [vmem:[%s175_s30 + $0x58] sm:$0xff]  ;;  %v188_v10 = vld [vmem:[%s175_s30 + $0x60] sm:$0xff]  ;;  %v189_v12 = vld [vmem:[%s175_s30 + $0x68] sm:$0xff]  ;;  %s1149_s7 = sshll.u32 (%p170_p0), %s1009_s5, 7  ;;  %s1311_s25 = scalar_lea.vmem (%p170_p0), %s1980_s6, 8192 }
  0x23   : >> { %1186 = vmatprep.mubr.msk.f32.mxu1 %vm192_vm0, %v186_v6  ;;  %v182_v13 = vld [vmem:[%s175_s30 + $0x30] sm:$0xff]  ;;  %v183_v15 = vld [vmem:[%s175_s30 + $0x38] sm:$0xff]  ;;  %s1985_s21 = scalar_lea.hbm (%p170_p0), %s2042_s2, %s1149_s7  ;;  %p1312_p1 = scmp.ne.s32.totalorder (%p170_p0), %s1980_s6, %s1311_s25 }
  0x24   : >> { %v190_v14 = vld [vmem:[%s175_s30 + $0x70] sm:$0xff]  ;;  %v191_v16 = vld [vmem:[%s175_s30 + $0x78] sm:$0xff]  ;;  %s1413_s12 = smov (%p170_p0), [#allocation2]  }
  0x25   : >> { %1175 = vmatmul.mubr.msk.f32.gmra.mxu0 %vm192_vm0, %v179_v7  ;;  %p1313_p2 = pnand (%p170_p0), %p1312_p1, %p1483_p3  ;;  %s1315_s13 = sshll.u32 (%p170_p0), %s1413_s12, 4  ;;  %s1316_s13 = int_to_ptr.vmem [resolvable:$false] %s1315_s13 }
  0x26   : >> { %1187 = vmatmul.mubr.msk.f32.gmra.mxu1 %vm192_vm0, %v187_v8  ;;  %1177 = vmatprep.mubr.msk.f32.mxu0 %vm192_vm0, %v180_v9  ;;  %s1317_s29 = scalar_lea.vmem (%p170_p0), %s1316_s13, 16384  ;;  %p1318_p5 = scmp.lt.s32.totalorder (%p170_p0), %s1980_s6, %s1316_s13 }
  0x27   : >> { %1189 = vmatprep.mubr.msk.f32.mxu1 %vm192_vm0, %v188_v10  ;;  %p1314_p4 = pneg (%p170_p0), %p1313_p2  ;;  %p1319_p6 = scmp.lt.s32.totalorder (%p170_p0), %s1317_s29, %s1311_s25 }
  0x29   : >> { %1178 = vmatmul.mubr.msk.f32.gmra.mxu0 %vm192_vm0, %v181_v11  ;;  %p1320_p7 = por (%p170_p0), %p1319_p6, %p1318_p5 }
  0x2a   : >> { %1190 = vmatmul.mubr.msk.f32.gmra.mxu1 %vm192_vm0, %v189_v12  ;;  %1180 = vmatprep.mubr.msk.f32.mxu0 %vm192_vm0, %v182_v13 }
  0x2b   : >> { %1192 = vmatprep.mubr.msk.f32.mxu1 %vm192_vm0, %v190_v14  ;;  %p1321_p9 = pnand (%p170_p0), %p1320_p7, %p1314_p4 }
  0x2d   : >> { %1181 = vmatmul.mubr.msk.f32.gmra.mxu0 %vm192_vm0, %v183_v15 }
  0x2e   : >> { %1193 = vmatmul.mubr.msk.f32.gmra.mxu1 %vm192_vm0, %v191_v16 }
  0xe1   : >> { %v1173_v17 = vpop.f32.mrf.mxu0 }
  0xe2   : >> { %v1185_v18 = vpop.f32.mrf.mxu1  ;;  %v387_v19 = vadd.f32 0.5, %v1173_v17 }
  0xe3   : >> { %v395_v20 = vadd.f32 0.5, %v1185_v18  ;;  %v307_v21 = vpop.f32.mrf.mxu0 }
  0xe4   : >> { %v347_v22 = vpop.f32.mrf.mxu1  ;;  %v403_v23 = vfloor.f32 %v387_v19  ;;  %v386_v25 = vadd.f32 0.5, %v307_v21 }
  0xe5   : >> { %v411_v24 = vfloor.f32 %v395_v20  ;;  %v394_v26 = vadd.f32 0.5, %v347_v22  ;;  %v1553_v37 = vpop.f32.mrf.mxu0 }
  0xe6   : >> { %v419_v27 = vsub.f32 %v1173_v17, %v403_v23  ;;  %v1199_v28 = vtrunc.f32 %v403_v23  ;;  %v402_v31 = vfloor.f32 %v386_v25  ;;  %v1555_v38 = vpop.f32.mrf.mxu1  ;;  %v1564_v47 = vadd.f32 0.5, %v1553_v37 }
  0xe7   : >> { %v427_v29 = vsub.f32 %v1185_v18, %v411_v24  ;;  %v1215_v30 = vtrunc.f32 %v411_v24  ;;  %v410_v32 = vfloor.f32 %v394_v26  ;;  %v1567_v48 = vadd.f32 0.5, %v1555_v38 }
  0xe8   : >> { %v1200_v33 = vcvt.f32.s32 %v1199_v28  ;;  %v1549_v34 = vmul.f32 1.5707964, %v419_v27  ;;  %v418_v39 = vsub.f32 %v307_v21, %v402_v31  ;;  %v1197_v40 = vtrunc.f32 %v402_v31 }
  0xe9   : >> { %v1216_v35 = vcvt.f32.s32 %v1215_v30  ;;  %v1551_v36 = vmul.f32 1.5707964, %v427_v29  ;;  %v426_v41 = vsub.f32 %v347_v22, %v410_v32  ;;  %v1557_v42 = vtrunc.f32 %v410_v32 }
  0xea   : >> { %v451_v43 = vand.u32 3, %v1200_v33  ;;  %v483_v44 = vmul.f32 %v1549_v34, %v1549_v34  ;;  %v1198_v51 = vcvt.f32.s32 %v1197_v40  ;;  %v1569_v52 = vmul.f32 1.5707964, %v418_v39 }
  0xeb   : >> { %v491_v45 = vmul.f32 %v1551_v36, %v1551_v36  ;;  %v459_v46 = vand.u32 3, %v1216_v35  ;;  %v1214_v55 = vcvt.f32.s32 %v1557_v42  ;;  %v1572_v56 = vmul.f32 1.5707964, %v426_v41 }
  0xec   : >> { %v499_v49 = vmul.f32 -0.00019515296, %v483_v44  ;;  %v611_v50 = vmul.f32 2.4433157e-05, %v483_v44  ;;  %v883_v53 = vadd.s32 1, %v451_v43  ;;  %v675_v59 = vmul.f32 %v483_v44, %v483_v44 }
  0xed   : >> { %v507_v54 = vmul.f32 -0.00019515296, %v491_v45  ;;  %v619_v60 = vmul.f32 2.4433157e-05, %v491_v45  ;;  %v707_v61 = vmul.f32 0.5, %v483_v44  ;;  %v755_v62 = vand.u32 1, %v451_v43 }
  0xee   : >> { %v515_v57 = vadd.f32 0.008332161, %v499_v49  ;;  %v627_v58 = vadd.f32 -0.0013887316, %v611_v50  ;;  %v819_v63 = vand.u32 2, %v451_v43  ;;  %v899_v4 = vand.u32 2, %v883_v53 }
  0xef   : >> { %v523_v1 = vadd.f32 0.008332161, %v507_v54  ;;  %v635_v5 = vadd.f32 -0.0013887316, %v619_v60  ;;  %v683_v7 = vmul.f32 %v491_v45, %v491_v45  ;;  %v763_v8 = vand.u32 1, %v459_v46 }
  0xf0   : >> { %v531_v2 = vmul.f32 %v515_v57, %v483_v44  ;;  %v643_v3 = vmul.f32 %v627_v58, %v483_v44  ;;  %v827_v9 = vand.u32 2, %v459_v46  ;;  %v891_v13 = vadd.s32 1, %v459_v46 }
  0xf1   : >> { %v539_v6 = vmul.f32 %v523_v1, %v491_v45  ;;  %v651_v12 = vmul.f32 %v635_v5, %v491_v45  ;;  %vm1574_vm1 = vcmp.eq.s32.totalorder %v755_v62, 1  ;;  %v715_v16 = vmul.f32 0.5, %v491_v45 }
  0xf2   : >> { %v547_v10 = vadd.f32 -0.16666655, %v531_v2  ;;  %v659_v11 = vadd.f32 0.041666646, %v643_v3  ;;  %v450_v17 = vand.u32 3, %v1198_v51  ;;  %vm1578_vm2 = vcmp.eq.s32.totalorder %v819_v63, 2 }
  0xf3   : >> { %v555_v15 = vadd.f32 -0.16666655, %v539_v6  ;;  %vm1582_vm3 = vcmp.eq.s32.totalorder %v899_v4, 2  ;;  %v667_v22 = vadd.f32 0.041666646, %v651_v12  ;;  %vm1586_vm4 = vcmp.eq.s32.totalorder %v763_v8, 1 }
  0xf4   : >> { %v563_v18 = vmul.f32 %v547_v10, %v483_v44  ;;  %v691_v19 = vmul.f32 %v675_v59, %v659_v11  ;;  %v907_v25 = vand.u32 2, %v891_v13  ;;  %v482_v26 = vmul.f32 %v1569_v52, %v1569_v52 }
  0xf5   : >> { %v571_v23 = vmul.f32 %v555_v15, %v491_v45  ;;  %v699_v29 = vmul.f32 %v683_v7, %v667_v22  ;;  %vm1593_vm5 = vcmp.eq.s32.totalorder %v827_v9, 2  ;;  %v754_v35 = vand.u32 1, %v450_v17  ;;  %v1651_v22 = vpop.f32.mrf.mxu0 }
  0xf6   : >> { %v579_v27 = vmul.f32 %v563_v18, %v1549_v34  ;;  %v723_v28 = vsub.f32 %v691_v19, %v707_v61  ;;  %v498_v32 = vmul.f32 -0.00019515296, %v482_v26  ;;  %v610_v33 = vmul.f32 2.4433157e-05, %v482_v26 }
  0xf7   : >> { %v587_v31 = vmul.f32 %v571_v23, %v1551_v36  ;;  %v731_v41 = vsub.f32 %v699_v29, %v715_v16  ;;  %v818_v43 = vand.u32 2, %v450_v17  ;;  %vm1600_vm6 = vcmp.eq.s32.totalorder %v907_v25, 2 }
  0xf8   : >> { %v595_v39 = vadd.f32 %v579_v27, %v1549_v34  ;;  %v739_v40 = vadd.f32 1.0, %v723_v28  ;;  %v514_v46 = vadd.f32 0.008332161, %v498_v32  ;;  %v626_v49 = vadd.f32 -0.0013887316, %v610_v33 }
  0xf9   : >> { %v603_v44 = vadd.f32 %v587_v31, %v1551_v36  ;;  %v747_v53 = vadd.f32 1.0, %v731_v41  ;;  %v674_v54 = vmul.f32 %v482_v26, %v482_v26  ;;  %v882_v61 = vadd.s32 1, %v450_v17 }
  0xfa   : >> { %v787_v50 = vsel %vm1574_vm1, %v739_v40, %v595_v39  ;;  %v803_v51 = vsel %vm1574_vm1, %v595_v39, %v739_v40  ;;  %v530_v57 = vmul.f32 %v514_v46, %v482_v26  ;;  %v642_v58 = vmul.f32 %v626_v49, %v482_v26 }
  0xfb   : >> { %v851_v34 = vsub.f32 0.0, %v787_v50  ;;  %v931_v36 = vsub.f32 0.0, %v803_v51  ;;  %v795_v59 = vsel %vm1586_vm4, %v747_v53, %v603_v44  ;;  %v811_v60 = vsel %vm1586_vm4, %v603_v44, %v747_v53 }
  0xfc   : >> { %v1620_v62 = vand.u32 3, %v1214_v55  ;;  %v859_v2 = vsub.f32 0.0, %v795_v59  ;;  %v939_v3 = vsub.f32 0.0, %v811_v60  ;;  %v546_v4 = vadd.f32 -0.16666655, %v530_v57  ;;  %v1679_v57 = vpop.f32.mrf.mxu1 }
  0xfd   : >> { %v867_v63 = vsel %vm1578_vm2, %v851_v34, %v787_v50  ;;  %v947_v1 = vsel %vm1582_vm3, %v931_v36, %v803_v51  ;;  %v658_v5 = vadd.f32 0.041666646, %v642_v58  ;;  %v898_v6 = vand.u32 2, %v882_v61 }
  0xfe   : >> { %965 = vst [vmem:[%s1612_s3 + $0x8] sm:$0xff] %v867_v63  ;;  %1132 = vst [vmem:[%s1612_s3 + $0x108] sm:$0xff] %v947_v1  ;;  %v490_v42 = vmul.f32 %v1572_v56, %v1572_v56  ;;  %v875_v55 = vsel %vm1593_vm5, %v859_v2, %v795_v59  ;;  %v955_v7 = vsel %vm1600_vm6, %v939_v3, %v811_v60  ;;  %v706_v8 = vmul.f32 0.5, %v482_v26 }
  0xff   : >> { %vm1634_vm7 = vcmp.eq.s32.totalorder %v754_v35, 1  ;;  %973 = vst [vmem:[%s1612_s3 + $0x48] sm:$0xff] %v875_v55  ;;  %1140 = vst [vmem:[%s1612_s3 + $0x148] sm:$0xff] %v955_v7  ;;  %v562_v10 = vmul.f32 %v546_v4, %v482_v26  ;;  %v690_v11 = vmul.f32 %v674_v54, %v658_v5  ;;  %vm1640_vm8 = vcmp.eq.s32.totalorder %v818_v43, 2 }
 0x100   : >> { %v506_v13 = vmul.f32 -0.00019515296, %v490_v42  ;;  %vm1644_vm9 = vcmp.eq.s32.totalorder %v898_v6, 2  ;;  %v618_v15 = vmul.f32 2.4433157e-05, %v490_v42  ;;  %v762_v16 = vand.u32 1, %v1620_v62 }
 0x101   : >> { %v826_v17 = vand.u32 2, %v1620_v62  ;;  %v578_v18 = vmul.f32 %v562_v10, %v1569_v52  ;;  %v722_v19 = vsub.f32 %v690_v11, %v706_v8  ;;  %v682_v21 = vmul.f32 %v490_v42, %v490_v42 }
 0x102   : >> { %v522_v20 = vadd.f32 0.008332161, %v506_v13  ;;  %v634_v23 = vadd.f32 -0.0013887316, %v618_v15  ;;  %v890_v24 = vadd.s32 1, %v1620_v62  ;;  %v405_v25 = vfloor.f32 %v1564_v47 }
 0x103   : >> { %v413_v26 = vfloor.f32 %v1567_v48  ;;  %v594_v27 = vadd.f32 %v578_v18, %v1569_v52  ;;  %v738_v28 = vadd.f32 1.0, %v722_v19  ;;  %v714_v30 = vmul.f32 0.5, %v490_v42 }
 0x104   : >> { %v538_v29 = vmul.f32 %v522_v20, %v490_v42  ;;  %v650_v31 = vmul.f32 %v634_v23, %v490_v42  ;;  %v421_v32 = vsub.f32 %v1553_v37, %v405_v25  ;;  %v1203_v33 = vtrunc.f32 %v405_v25 }
 0x105   : >> { %v1659_v35 = vadd.f32 0.5, %v1651_v22  ;;  %v786_v39 = vsel %vm1634_vm7, %v738_v28, %v594_v27  ;;  %v802_v47 = vsel %vm1634_vm7, %v594_v27, %v738_v28  ;;  %v429_v52 = vsub.f32 %v1555_v38, %v413_v26 }
 0x106   : >> { %v554_v48 = vadd.f32 -0.16666655, %v538_v29  ;;  %v850_v40 = vsub.f32 0.0, %v786_v39  ;;  %v930_v41 = vsub.f32 0.0, %v802_v47  ;;  %v666_v43 = vadd.f32 0.041666646, %v650_v31 }
 0x107   : >> { %v906_v44 = vand.u32 2, %v890_v24  ;;  %v1204_v45 = vcvt.f32.s32 %v1203_v33  ;;  %v1666_v46 = vmul.f32 1.5707964, %v421_v32  ;;  %v1219_v49 = vtrunc.f32 %v413_v26 }
 0x108   : >> { %v570_v37 = vmul.f32 %v554_v48, %v490_v42  ;;  %v866_v50 = vsel %vm1640_vm8, %v850_v40, %v786_v39  ;;  %v946_v51 = vsel %vm1644_vm9, %v930_v41, %v802_v47  ;;  %v698_v53 = vmul.f32 %v682_v21, %v666_v43 }
 0x109   : >> { %v1672_v54 = vmul.f32 1.5707964, %v429_v52  ;;  %964 = vst [vmem:[%s1612_s3] sm:$0xff] %v866_v50  ;;  %1131 = vst [vmem:[%s1612_s3 + $0x100] sm:$0xff] %v946_v51  ;;  %v453_v34 = vand.u32 3, %v1204_v45  ;;  %v485_v36 = vmul.f32 %v1666_v46, %v1666_v46  ;;  %vm1681_vm10 = vcmp.eq.s32.totalorder %v762_v16, 1 }
 0x10a   : >> { %v586_v38 = vmul.f32 %v570_v37, %v1572_v56  ;;  %v730_v58 = vsub.f32 %v698_v53, %v714_v30  ;;  %vm1685_vm11 = vcmp.eq.s32.totalorder %v826_v17, 2  ;;  %v1220_v61 = vcvt.f32.s32 %v1219_v49 }
 0x10b   : >> { %vm1690_vm12 = vcmp.eq.s32.totalorder %v906_v44, 2  ;;  %v501_v1 = vmul.f32 -0.00019515296, %v485_v36  ;;  %v613_v2 = vmul.f32 2.4433157e-05, %v485_v36  ;;  %v493_v4 = vmul.f32 %v1672_v54, %v1672_v54 }
 0x10c   : >> { %v602_v62 = vadd.f32 %v586_v38, %v1572_v56  ;;  %v746_v3 = vadd.f32 1.0, %v730_v58  ;;  %v404_v5 = vfloor.f32 %v1659_v35  ;;  %v1698_v6 = vadd.f32 0.5, %v1679_v57 }
 0x10d   : >> { %v517_v42 = vadd.f32 0.008332161, %v501_v1  ;;  %v629_v55 = vadd.f32 -0.0013887316, %v613_v2  ;;  %v757_v7 = vand.u32 1, %v453_v34  ;;  %v885_v8 = vadd.s32 1, %v453_v34 }
 0x10e   : >> { %v794_v56 = vsel %vm1681_vm10, %v746_v3, %v602_v62  ;;  %v810_v9 = vsel %vm1681_vm10, %v602_v62, %v746_v3  ;;  %v821_v10 = vand.u32 2, %v453_v34  ;;  %v461_v11 = vand.u32 3, %v1220_v61 }
 0x10f   : >> { %v858_v12 = vsub.f32 0.0, %v794_v56  ;;  %v938_v13 = vsub.f32 0.0, %v810_v9  ;;  %v533_v14 = vmul.f32 %v517_v42, %v485_v36  ;;  %v645_v15 = vmul.f32 %v629_v55, %v485_v36 }
 0x110   : >> { %v677_v16 = vmul.f32 %v485_v36, %v485_v36  ;;  %v901_v17 = vand.u32 2, %v885_v8  ;;  %v509_v18 = vmul.f32 -0.00019515296, %v493_v4  ;;  %v621_v19 = vmul.f32 2.4433157e-05, %v493_v4 }
 0x111   : >> { %v874_v20 = vsel %vm1685_vm11, %v858_v12, %v794_v56  ;;  %v954_v21 = vsel %vm1690_vm12, %v938_v13, %v810_v9  ;;  %v549_v23 = vadd.f32 -0.16666655, %v533_v14  ;;  %v661_v24 = vadd.f32 0.041666646, %v645_v15  ;;  %v1179_v56 = vpop.f32.mrf.mxu0 }
 0x112   : >> { %972 = vst [vmem:[%s1612_s3 + $0x40] sm:$0xff] %v874_v20  ;;  %1139 = vst [vmem:[%s1612_s3 + $0x140] sm:$0xff] %v954_v21  ;;  %v709_v25 = vmul.f32 0.5, %v485_v36  ;;  %vm1710_vm13 = vcmp.eq.s32.totalorder %v757_v7, 1  ;;  %v525_v27 = vadd.f32 0.008332161, %v509_v18  ;;  %v685_v32 = vmul.f32 %v493_v4, %v493_v4  ;;  %v1191_v20 = vpop.f32.mrf.mxu1 }
 0x113   : >> { %v637_v28 = vadd.f32 -0.0013887316, %v621_v19  ;;  %v565_v29 = vmul.f32 %v549_v23, %v485_v36  ;;  %v693_v30 = vmul.f32 %v677_v16, %v661_v24  ;;  %vm1714_vm14 = vcmp.eq.s32.totalorder %v821_v10, 2 }
 0x114   : >> { %v765_v33 = vand.u32 1, %v461_v11  ;;  %v541_v35 = vmul.f32 %v525_v27, %v493_v4  ;;  %v893_v47 = vadd.s32 1, %v461_v11  ;;  %v420_v48 = vsub.f32 %v1651_v22, %v404_v5 }
 0x115   : >> { %v653_v39 = vmul.f32 %v637_v28, %v493_v4  ;;  %v581_v52 = vmul.f32 %v565_v29, %v1666_v46  ;;  %v725_v40 = vsub.f32 %v693_v30, %v709_v25  ;;  %vm1720_vm15 = vcmp.eq.s32.totalorder %v901_v17, 2 }
 0x116   : >> { %v717_v43 = vmul.f32 0.5, %v493_v4  ;;  %v557_v44 = vadd.f32 -0.16666655, %v541_v35  ;;  %v829_v45 = vand.u32 2, %v461_v11  ;;  %v1201_v49 = vtrunc.f32 %v404_v5 }
 0x117   : >> { %v669_v37 = vadd.f32 0.041666646, %v653_v39  ;;  %v597_v50 = vadd.f32 %v581_v52, %v1666_v46  ;;  %v741_v51 = vadd.f32 1.0, %v725_v40  ;;  %vm1725_vm0 = vcmp.eq.s32.totalorder %v765_v33, 1  ;;  %v1772_v52 = vpop.f32.mrf.mxu1 }
 0x118   : >> { %v1729_v22 = vmul.f32 1.5707964, %v420_v48  ;;  %v573_v38 = vmul.f32 %v557_v44, %v493_v4  ;;  %v909_v36 = vand.u32 2, %v893_v47  ;;  %v1202_v58 = vcvt.f32.s32 %v1201_v49 }
 0x119   : >> { %v701_v34 = vmul.f32 %v685_v32, %v669_v37  ;;  %v789_v59 = vsel %vm1710_vm13, %v741_v51, %v597_v50  ;;  %v805_v60 = vsel %vm1710_vm13, %v597_v50, %v741_v51  ;;  %v412_v61 = vfloor.f32 %v1698_v6 }
 0x11a   : >> { %v484_v46 = vmul.f32 %v1729_v22, %v1729_v22  ;;  %v853_v62 = vsub.f32 0.0, %v789_v59  ;;  %v933_v63 = vsub.f32 0.0, %v805_v60  ;;  %v589_v1 = vmul.f32 %v573_v38, %v1672_v54 }
 0x11b   : >> { %v733_v2 = vsub.f32 %v701_v34, %v717_v43  ;;  %vm1739_vm1 = vcmp.eq.s32.totalorder %v829_v45, 2  ;;  %v452_v4 = vand.u32 3, %v1202_v58  ;;  %vm1750_vm2 = vcmp.eq.s32.totalorder %v909_v36, 2 }
 0x11c   : >> { %v500_v5 = vmul.f32 -0.00019515296, %v484_v46  ;;  %v612_v42 = vmul.f32 2.4433157e-05, %v484_v46  ;;  %v869_v55 = vsel %vm1714_vm14, %v853_v62, %v789_v59  ;;  %v949_v7 = vsel %vm1720_vm15, %v933_v63, %v805_v60 }
 0x11d   : >> { %v605_v6 = vadd.f32 %v589_v1, %v1672_v54  ;;  %v749_v8 = vadd.f32 1.0, %v733_v2  ;;  %967 = vst [vmem:[%s1612_s3 + $0x18] sm:$0xff] %v869_v55  ;;  %1134 = vst [vmem:[%s1612_s3 + $0x118] sm:$0xff] %v949_v7  ;;  %v428_v12 = vsub.f32 %v1679_v57, %v412_v61  ;;  %v676_v15 = vmul.f32 %v484_v46, %v484_v46  ;;  %v1759_v57 = vpop.f32.mrf.mxu0 }
 0x11e   : >> { %v516_v10 = vadd.f32 0.008332161, %v500_v5  ;;  %v628_v11 = vadd.f32 -0.0013887316, %v612_v42  ;;  %v884_v54 = vadd.s32 1, %v452_v4  ;;  %v756_v21 = vand.u32 1, %v452_v4 }
 0x11f   : >> { %v797_v13 = vsel %vm1725_vm0, %v749_v8, %v605_v6  ;;  %v813_v14 = vsel %vm1725_vm0, %v605_v6, %v749_v8  ;;  %v820_v23 = vand.u32 2, %v452_v4  ;;  %v1217_v25 = vtrunc.f32 %v412_v61 }
 0x120   : >> { %v861_v16 = vsub.f32 0.0, %v797_v13  ;;  %v941_v17 = vsub.f32 0.0, %v813_v14  ;;  %v532_v18 = vmul.f32 %v516_v10, %v484_v46  ;;  %v644_v19 = vmul.f32 %v628_v11, %v484_v46 }
 0x121   : >> { %v900_v24 = vand.u32 2, %v884_v54  ;;  %v708_v30 = vmul.f32 0.5, %v484_v46  ;;  %v1218_v31 = vcvt.f32.s32 %v1217_v25  ;;  %v1767_v32 = vmul.f32 1.5707964, %v428_v12 }
 0x122   : >> { %v877_v26 = vsel %vm1739_vm1, %v861_v16, %v797_v13  ;;  %v957_v27 = vsel %vm1750_vm2, %v941_v17, %v813_v14  ;;  %v548_v28 = vadd.f32 -0.16666655, %v532_v18  ;;  %v660_v29 = vadd.f32 0.041666646, %v644_v19 }
 0x123   : >> { %975 = vst [vmem:[%s1612_s3 + $0x58] sm:$0xff] %v877_v26  ;;  %1142 = vst [vmem:[%s1612_s3 + $0x158] sm:$0xff] %v957_v27  ;;  %v391_v33 = vadd.f32 0.5, %v1179_v56  ;;  %v399_v47 = vadd.f32 0.5, %v1191_v20  ;;  %v1770_v48 = vadd.f32 0.5, %v1759_v57  ;;  %vm1774_vm3 = vcmp.eq.s32.totalorder %v756_v21, 1 }
 0x124   : >> { %v564_v35 = vmul.f32 %v548_v28, %v484_v46  ;;  %v692_v39 = vmul.f32 %v676_v15, %v660_v29  ;;  %v460_v41 = vand.u32 3, %v1218_v31  ;;  %v492_v43 = vmul.f32 %v1767_v32, %v1767_v32 }
 0x125   : >> { %v407_v44 = vfloor.f32 %v391_v33  ;;  %vm1781_vm4 = vcmp.eq.s32.totalorder %v820_v23, 2  ;;  %vm1785_vm5 = vcmp.eq.s32.totalorder %v900_v24, 2  ;;  %v415_v38 = vfloor.f32 %v399_v47 }
 0x126   : >> { %v580_v37 = vmul.f32 %v564_v35, %v1729_v22  ;;  %v724_v45 = vsub.f32 %v692_v39, %v708_v30  ;;  %v508_v51 = vmul.f32 -0.00019515296, %v492_v43  ;;  %v620_v53 = vmul.f32 2.4433157e-05, %v492_v43 }
 0x127   : >> { %v1790_v34 = vadd.f32 0.5, %v1772_v52  ;;  %v684_v59 = vmul.f32 %v492_v43, %v492_v43  ;;  %v406_v60 = vfloor.f32 %v1770_v48  ;;  %v892_v62 = vadd.s32 1, %v460_v41 }
 0x128   : >> { %v596_v36 = vadd.f32 %v580_v37, %v1729_v22  ;;  %v740_v58 = vadd.f32 1.0, %v724_v45  ;;  %v524_v46 = vadd.f32 0.008332161, %v508_v51  ;;  %v636_v61 = vadd.f32 -0.0013887316, %v620_v53 }
 0x129   : >> { %v423_v63 = vsub.f32 %v1179_v56, %v407_v44  ;;  %v764_v3 = vand.u32 1, %v460_v41  ;;  %v828_v4 = vand.u32 2, %v460_v41  ;;  %v908_v7 = vand.u32 2, %v892_v62 }
 0x12a   : >> { %v788_v1 = vsel %vm1774_vm3, %v740_v58, %v596_v36  ;;  %v804_v2 = vsel %vm1774_vm3, %v596_v36, %v740_v58  ;;  %v540_v42 = vmul.f32 %v524_v46, %v492_v43  ;;  %v652_v55 = vmul.f32 %v636_v61, %v492_v43 }
 0x12b   : >> { %v852_v5 = vsub.f32 0.0, %v788_v1  ;;  %v932_v22 = vsub.f32 0.0, %v804_v2  ;;  %v1207_v6 = vtrunc.f32 %v407_v44  ;;  %v1798_v8 = vmul.f32 1.5707964, %v423_v63 }
 0x12c   : >> { %v431_v9 = vsub.f32 %v1191_v20, %v415_v38  ;;  %v556_v11 = vadd.f32 -0.16666655, %v540_v42  ;;  %v668_v12 = vadd.f32 0.041666646, %v652_v55  ;;  %v716_v13 = vmul.f32 0.5, %v492_v43 }
 0x12d   : >> { %v868_v56 = vsel %vm1781_vm4, %v852_v5, %v788_v1  ;;  %v948_v10 = vsel %vm1785_vm5, %v932_v22, %v804_v2  ;;  %v1208_v14 = vcvt.f32.s32 %v1207_v6  ;;  %v487_v15 = vmul.f32 %v1798_v8, %v1798_v8 }
 0x12e   : >> { %966 = vst [vmem:[%s1612_s3 + $0x10] sm:$0xff] %v868_v56  ;;  %1133 = vst [vmem:[%s1612_s3 + $0x110] sm:$0xff] %v948_v10  ;;  %v1223_v54 = vtrunc.f32 %v415_v38  ;;  %v572_v16 = vmul.f32 %v556_v11, %v492_v43  ;;  %v700_v17 = vmul.f32 %v684_v59, %v668_v12  ;;  %vm1808_vm6 = vcmp.eq.s32.totalorder %v764_v3, 1 }
 0x12f   : >> { %vm1812_vm7 = vcmp.eq.s32.totalorder %v828_v4, 2  ;;  %vm1816_vm8 = vcmp.eq.s32.totalorder %v908_v7, 2  ;;  %v455_v21 = vand.u32 3, %v1208_v14  ;;  %v503_v23 = vmul.f32 -0.00019515296, %v487_v15 }
 0x130   : >> { %v615_v24 = vmul.f32 2.4433157e-05, %v487_v15  ;;  %v588_v25 = vmul.f32 %v572_v16, %v1767_v32  ;;  %v732_v26 = vsub.f32 %v700_v17, %v716_v13  ;;  %v1224_v27 = vcvt.f32.s32 %v1223_v54 }
 0x131   : >> { %v1821_v28 = vmul.f32 1.5707964, %v431_v9  ;;  %v519_v29 = vadd.f32 0.008332161, %v503_v23  ;;  %v679_v31 = vmul.f32 %v487_v15, %v487_v15  ;;  %v422_v33 = vsub.f32 %v1759_v57, %v406_v60 }
 0x132   : >> { %v631_v30 = vadd.f32 -0.0013887316, %v615_v24  ;;  %v604_v35 = vadd.f32 %v588_v25, %v1767_v32  ;;  %v748_v39 = vadd.f32 1.0, %v732_v26  ;;  %v759_v47 = vand.u32 1, %v455_v21 }
 0x133   : >> { %v887_v40 = vadd.s32 1, %v455_v21  ;;  %v535_v41 = vmul.f32 %v519_v29, %v487_v15  ;;  %v823_v44 = vand.u32 2, %v455_v21  ;;  %v463_v37 = vand.u32 3, %v1224_v27 }
 0x134   : >> { %v647_v43 = vmul.f32 %v631_v30, %v487_v15  ;;  %v796_v45 = vsel %vm1808_vm6, %v748_v39, %v604_v35  ;;  %v812_v49 = vsel %vm1808_vm6, %v604_v35, %v748_v39  ;;  %v495_v57 = vmul.f32 %v1821_v28, %v1821_v28 }
 0x135   : >> { %v903_v50 = vand.u32 2, %v887_v40  ;;  %v860_v32 = vsub.f32 0.0, %v796_v45  ;;  %v940_v51 = vsub.f32 0.0, %v812_v49  ;;  %v551_v53 = vadd.f32 -0.16666655, %v535_v41 }
 0x136   : >> { %v663_v38 = vadd.f32 0.041666646, %v647_v43  ;;  %v711_v36 = vmul.f32 0.5, %v487_v15  ;;  %vm1833_vm9 = vcmp.eq.s32.totalorder %v759_v47, 1  ;;  %v511_v59 = vmul.f32 -0.00019515296, %v495_v57 }
 0x137   : >> { %v623_v46 = vmul.f32 2.4433157e-05, %v495_v57  ;;  %v876_v61 = vsel %vm1812_vm7, %v860_v32, %v796_v45  ;;  %v956_v62 = vsel %vm1816_vm8, %v940_v51, %v812_v49  ;;  %v567_v63 = vmul.f32 %v551_v53, %v487_v15 }
 0x138   : >> { %v695_v1 = vmul.f32 %v679_v31, %v663_v38  ;;  %974 = vst [vmem:[%s1612_s3 + $0x50] sm:$0xff] %v876_v61  ;;  %1141 = vst [vmem:[%s1612_s3 + $0x150] sm:$0xff] %v956_v62  ;;  %vm1843_vm10 = vcmp.eq.s32.totalorder %v823_v44, 2  ;;  %vm1847_vm11 = vcmp.eq.s32.totalorder %v903_v50, 2  ;;  %v527_v4 = vadd.f32 0.008332161, %v511_v59 }
 0x139   : >> { %v639_v5 = vadd.f32 -0.0013887316, %v623_v46  ;;  %v583_v22 = vmul.f32 %v567_v63, %v1798_v8  ;;  %v687_v55 = vmul.f32 %v495_v57, %v495_v57  ;;  %v895_v7 = vadd.s32 1, %v463_v37 }
 0x13a   : >> { %v727_v42 = vsub.f32 %v695_v1, %v711_v36  ;;  %v543_v6 = vmul.f32 %v527_v4, %v495_v57  ;;  %v719_v56 = vmul.f32 0.5, %v495_v57  ;;  %v1205_v10 = vtrunc.f32 %v406_v60 }
 0x13b   : >> { %v655_v9 = vmul.f32 %v639_v5, %v495_v57  ;;  %v599_v11 = vadd.f32 %v583_v22, %v1798_v8  ;;  %v767_v13 = vand.u32 1, %v463_v37  ;;  %v831_v14 = vand.u32 2, %v463_v37 }
 0x13c   : >> { %v743_v12 = vadd.f32 1.0, %v727_v42  ;;  %v559_v15 = vadd.f32 -0.16666655, %v543_v6  ;;  %v1206_v16 = vcvt.f32.s32 %v1205_v10  ;;  %v1855_v17 = vmul.f32 1.5707964, %v422_v33 }
 0x13d   : >> { %v671_v54 = vadd.f32 0.041666646, %v655_v9  ;;  %v911_v48 = vand.u32 2, %v895_v7  ;;  %v414_v60 = vfloor.f32 %v1790_v34  ;;  %vm1862_vm12 = vcmp.eq.s32.totalorder %v767_v13, 1 }
 0x13e   : >> { %v791_v18 = vsel %vm1833_vm9, %v743_v12, %v599_v11  ;;  %v807_v19 = vsel %vm1833_vm9, %v599_v11, %v743_v12  ;;  %v575_v21 = vmul.f32 %v559_v15, %v495_v57  ;;  %v454_v25 = vand.u32 3, %v1206_v16  ;;  %v1182_v57 = vpop.f32.mrf.mxu0  ;;  %v1194_v11 = vpop.f32.mrf.mxu1 }
 0x13f   : >> { %v855_v8 = vsub.f32 0.0, %v791_v18  ;;  %v935_v20 = vsub.f32 0.0, %v807_v19  ;;  %v703_v23 = vmul.f32 %v687_v55, %v671_v54  ;;  %v486_v26 = vmul.f32 %v1855_v17, %v1855_v17 }
 0x140   : >> { %v1221_v27 = vtrunc.f32 %v414_v60  ;;  %v591_v34 = vmul.f32 %v575_v21, %v1821_v28  ;;  %vm1875_vm13 = vcmp.eq.s32.totalorder %v831_v14, 2  ;;  %vm1879_vm14 = vcmp.eq.s32.totalorder %v911_v48, 2 }
 0x141   : >> { %v871_v29 = vsel %vm1843_vm10, %v855_v8, %v791_v18  ;;  %v951_v30 = vsel %vm1847_vm11, %v935_v20, %v807_v19  ;;  %v735_v31 = vsub.f32 %v703_v23, %v719_v56  ;;  %v502_v39 = vmul.f32 -0.00019515296, %v486_v26 }
 0x142   : >> { %969 = vst [vmem:[%s1612_s3 + $0x28] sm:$0xff] %v871_v29  ;;  %1136 = vst [vmem:[%s1612_s3 + $0x128] sm:$0xff] %v951_v30  ;;  %v614_v47 = vmul.f32 2.4433157e-05, %v486_v26  ;;  %v607_v40 = vadd.f32 %v591_v34, %v1821_v28  ;;  %v678_v43 = vmul.f32 %v486_v26, %v486_v26  ;;  %v430_v44 = vsub.f32 %v1772_v52, %v414_v60 }
 0x143   : >> { %v751_v41 = vadd.f32 1.0, %v735_v31  ;;  %v518_v37 = vadd.f32 0.008332161, %v502_v39  ;;  %v886_v49 = vadd.s32 1, %v454_v25  ;;  %v1222_v50 = vcvt.f32.s32 %v1221_v27 }
 0x144   : >> { %v630_v45 = vadd.f32 -0.0013887316, %v614_v47  ;;  %v758_v53 = vand.u32 1, %v454_v25  ;;  %v822_v38 = vand.u32 2, %v454_v25  ;;  %v1889_v61 = vmul.f32 1.5707964, %v430_v44 }
 0x145   : >> { %v799_v32 = vsel %vm1862_vm12, %v751_v41, %v607_v40  ;;  %v815_v51 = vsel %vm1862_vm12, %v607_v40, %v751_v41  ;;  %v534_v58 = vmul.f32 %v518_v37, %v486_v26  ;;  %v902_v52 = vand.u32 2, %v886_v49 }
 0x146   : >> { %v863_v28 = vsub.f32 0.0, %v799_v32  ;;  %v943_v36 = vsub.f32 0.0, %v815_v51  ;;  %v646_v59 = vmul.f32 %v630_v45, %v486_v26  ;;  %v462_v46 = vand.u32 3, %v1222_v50 }
 0x147   : >> { %v393_v62 = vadd.f32 0.5, %v1182_v57  ;;  %v550_v2 = vadd.f32 -0.16666655, %v534_v58  ;;  %v710_v4 = vmul.f32 0.5, %v486_v26  ;;  %v494_v5 = vmul.f32 %v1889_v61, %v1889_v61 }
 0x148   : >> { %v879_v63 = vsel %vm1875_vm13, %v863_v28, %v799_v32  ;;  %v959_v1 = vsel %vm1879_vm14, %v943_v36, %v815_v51  ;;  %v662_v3 = vadd.f32 0.041666646, %v646_v59  ;;  %vm1899_vm15 = vcmp.eq.s32.totalorder %v758_v53, 1 }
 0x149   : >> { %977 = vst [vmem:[%s1612_s3 + $0x68] sm:$0xff] %v879_v63  ;;  %1144 = vst [vmem:[%s1612_s3 + $0x168] sm:$0xff] %v959_v1  ;;  %v566_v22 = vmul.f32 %v550_v2, %v486_v26  ;;  %v409_v7 = vfloor.f32 %v393_v62  ;;  %vm1903_vm0 = vcmp.eq.s32.totalorder %v822_v38, 2  ;;  %vm1907_vm1 = vcmp.eq.s32.totalorder %v902_v52, 2 }
 0x14a   : >> { %v694_v42 = vmul.f32 %v678_v43, %v662_v3  ;;  %v510_v56 = vmul.f32 -0.00019515296, %v494_v5  ;;  %v622_v10 = vmul.f32 2.4433157e-05, %v494_v5  ;;  %v766_v14 = vand.u32 1, %v462_v46 }
 0x14b   : >> { %v582_v12 = vmul.f32 %v566_v22, %v1855_v17  ;;  %v830_v15 = vand.u32 2, %v462_v46  ;;  %v894_v18 = vadd.s32 1, %v462_v46  ;;  %v425_v19 = vsub.f32 %v1182_v57, %v409_v7 }
 0x14c   : >> { %v726_v13 = vsub.f32 %v694_v42, %v710_v4  ;;  %v526_v54 = vadd.f32 0.008332161, %v510_v56  ;;  %v638_v16 = vadd.f32 -0.0013887316, %v622_v10  ;;  %v1211_v8 = vtrunc.f32 %v409_v7  ;;  %v337_v4 = vpop.f32.mrf.mxu0 }
 0x14d   : >> { %v598_v48 = vadd.f32 %v582_v12, %v1855_v17  ;;  %v401_v20 = vadd.f32 0.5, %v1194_v11  ;;  %v686_v24 = vmul.f32 %v494_v5, %v494_v5  ;;  %v1913_v25 = vmul.f32 1.5707964, %v425_v19  ;;  %v377_v19 = vpop.f32.mrf.mxu1 }
 0x14e   : >> { %v742_v60 = vadd.f32 1.0, %v726_v13  ;;  %v542_v21 = vmul.f32 %v526_v54, %v494_v5  ;;  %v654_v23 = vmul.f32 %v638_v16, %v494_v5  ;;  %v1212_v29 = vcvt.f32.s32 %v1211_v8 }
 0x14f   : >> { %v417_v30 = vfloor.f32 %v401_v20  ;;  %v718_v35 = vmul.f32 0.5, %v494_v5  ;;  %v910_v39 = vand.u32 2, %v894_v18  ;;  %v489_v40 = vmul.f32 %v1913_v25, %v1913_v25 }
 0x150   : >> { %v790_v26 = vsel %vm1899_vm15, %v742_v60, %v598_v48  ;;  %v806_v27 = vsel %vm1899_vm15, %v598_v48, %v742_v60  ;;  %v558_v31 = vadd.f32 -0.16666655, %v542_v21  ;;  %v670_v33 = vadd.f32 0.041666646, %v654_v23 }
 0x151   : >> { %v854_v34 = vsub.f32 0.0, %v790_v26  ;;  %v934_v17 = vsub.f32 0.0, %v806_v27  ;;  %v457_v47 = vand.u32 3, %v1212_v29  ;;  %vm1927_vm2 = vcmp.eq.s32.totalorder %v766_v14, 1 }
 0x152   : >> { %v574_v44 = vmul.f32 %v558_v31, %v494_v5  ;;  %v702_v37 = vmul.f32 %v686_v24, %v670_v33  ;;  %v505_v49 = vmul.f32 -0.00019515296, %v489_v40  ;;  %v617_v50 = vmul.f32 2.4433157e-05, %v489_v40 }
 0x153   : >> { %v870_v41 = vsel %vm1903_vm0, %v854_v34, %v790_v26  ;;  %v950_v43 = vsel %vm1907_vm1, %v934_v17, %v806_v27  ;;  %vm1932_vm3 = vcmp.eq.s32.totalorder %v830_v15, 2  ;;  %v433_v53 = vsub.f32 %v1194_v11, %v417_v30 }
 0x154   : >> { %968 = vst [vmem:[%s1612_s3 + $0x20] sm:$0xff] %v870_v41  ;;  %1135 = vst [vmem:[%s1612_s3 + $0x120] sm:$0xff] %v950_v43  ;;  %v590_v57 = vmul.f32 %v574_v44, %v1889_v61  ;;  %v734_v32 = vsub.f32 %v702_v37, %v718_v35  ;;  %vm1936_vm4 = vcmp.eq.s32.totalorder %v910_v39, 2  ;;  %v521_v28 = vadd.f32 0.008332161, %v505_v49 }
 0x155   : >> { %v633_v36 = vadd.f32 -0.0013887316, %v617_v50  ;;  %v1227_v58 = vtrunc.f32 %v417_v30  ;;  %v681_v46 = vmul.f32 %v489_v40, %v489_v40  ;;  %v889_v62 = vadd.s32 1, %v457_v47 }
 0x156   : >> { %v606_v59 = vadd.f32 %v590_v57, %v1889_v61  ;;  %v750_v52 = vadd.f32 1.0, %v734_v32  ;;  %v537_v63 = vmul.f32 %v521_v28, %v489_v40  ;;  %v713_v2 = vmul.f32 0.5, %v489_v40 }
 0x157   : >> { %v649_v1 = vmul.f32 %v633_v36, %v489_v40  ;;  %v761_v3 = vand.u32 1, %v457_v47  ;;  %v825_v42 = vand.u32 2, %v457_v47  ;;  %v481_v55 = vmul.f32 1.5707964, %v433_v53 }
 0x158   : >> { %v798_v5 = vsel %vm1927_vm2, %v750_v52, %v606_v59  ;;  %v814_v22 = vsel %vm1927_vm2, %v606_v59, %v750_v52  ;;  %v553_v6 = vadd.f32 -0.16666655, %v537_v63  ;;  %v905_v56 = vand.u32 2, %v889_v62 }
 0x159   : >> { %v862_v7 = vsub.f32 0.0, %v798_v5  ;;  %v942_v61 = vsub.f32 0.0, %v814_v22  ;;  %v665_v9 = vadd.f32 0.041666646, %v649_v1  ;;  %v1228_v10 = vcvt.f32.s32 %v1227_v58 }
 0x15a   : >> { %v497_v11 = vmul.f32 %v481_v55, %v481_v55  ;;  %v392_v12 = vadd.f32 0.5, %v337_v4  ;;  %v569_v15 = vmul.f32 %v553_v6, %v489_v40  ;;  %vm777_vm5 = vcmp.eq.s32.totalorder %v761_v3, 1 }
 0x15b   : >> { %v878_v13 = vsel %vm1932_vm3, %v862_v7, %v798_v5  ;;  %v958_v14 = vsel %vm1936_vm4, %v942_v61, %v814_v22  ;;  %v697_v54 = vmul.f32 %v681_v46, %v665_v9  ;;  %vm1952_vm6 = vcmp.eq.s32.totalorder %v825_v42, 2 }
 0x15c   : >> { %976 = vst [vmem:[%s1612_s3 + $0x60] sm:$0xff] %v878_v13  ;;  %1143 = vst [vmem:[%s1612_s3 + $0x160] sm:$0xff] %v958_v14  ;;  %v513_v16 = vmul.f32 -0.00019515296, %v497_v11  ;;  %v625_v18 = vmul.f32 2.4433157e-05, %v497_v11  ;;  %v585_v48 = vmul.f32 %v569_v15, %v1913_v25  ;;  %v408_v24 = vfloor.f32 %v392_v12 }
 0x15d   : >> { %v729_v60 = vsub.f32 %v697_v54, %v713_v2  ;;  %v465_v20 = vand.u32 3, %v1228_v10  ;;  %vm1957_vm7 = vcmp.eq.s32.totalorder %v905_v56, 2  ;;  %v400_v30 = vadd.f32 0.5, %v377_v19 }
 0x15e   : >> { %v529_v21 = vadd.f32 0.008332161, %v513_v16  ;;  %v641_v23 = vadd.f32 -0.0013887316, %v625_v18  ;;  %v601_v26 = vadd.f32 %v585_v48, %v1913_v25  ;;  %v689_v31 = vmul.f32 %v497_v11, %v497_v11 }
 0x15f   : >> { %v745_v27 = vadd.f32 1.0, %v729_v60  ;;  %v424_v33 = vsub.f32 %v337_v4, %v408_v24  ;;  %v1209_v47 = vtrunc.f32 %v408_v24  ;;  %v416_v40 = vfloor.f32 %v400_v30 }
 0x160   : >> { %v545_v34 = vmul.f32 %v529_v21, %v497_v11  ;;  %v657_v17 = vmul.f32 %v641_v23, %v497_v11  ;;  %v721_v37 = vmul.f32 0.5, %v497_v11  ;;  %v897_v45 = vadd.s32 1, %v465_v20 }
 0x161   : >> { %v793_v35 = vsel %vm777_vm5, %v745_v27, %v601_v26  ;;  %v809_v39 = vsel %vm777_vm5, %v601_v26, %v745_v27  ;;  %v472_v49 = vmul.f32 1.5707964, %v424_v33  ;;  %v432_v50 = vsub.f32 %v377_v19, %v416_v40 }
 0x162   : >> { %v857_v41 = vsub.f32 0.0, %v793_v35  ;;  %v937_v43 = vsub.f32 0.0, %v809_v39  ;;  %v561_v44 = vadd.f32 -0.16666655, %v545_v34  ;;  %v673_v25 = vadd.f32 0.041666646, %v657_v17 }
 0x163   : >> { %v769_v38 = vand.u32 1, %v465_v20  ;;  %v488_v28 = vmul.f32 %v472_v49, %v472_v49  ;;  %v833_v59 = vand.u32 2, %v465_v20  ;;  %v1210_v52 = vcvt.f32.s32 %v1209_v47 }
 0x164   : >> { %v873_v57 = vsel %vm1952_vm6, %v857_v41, %v793_v35  ;;  %v953_v32 = vsel %vm1957_vm7, %v937_v43, %v809_v39  ;;  %v577_v51 = vmul.f32 %v561_v44, %v497_v11  ;;  %v705_v53 = vmul.f32 %v689_v31, %v673_v25 }
 0x165   : >> { %971 = vst [vmem:[%s1612_s3 + $0x38] sm:$0xff] %v873_v57  ;;  %1138 = vst [vmem:[%s1612_s3 + $0x138] sm:$0xff] %v953_v32  ;;  %v913_v46 = vand.u32 2, %v897_v45  ;;  %v504_v62 = vmul.f32 -0.00019515296, %v488_v28  ;;  %v1225_v3 = vtrunc.f32 %v416_v40  ;;  %vm785_vm8 = vcmp.eq.s32.totalorder %v769_v38, 1 }
 0x166   : >> { %v593_v36 = vmul.f32 %v577_v51, %v481_v55  ;;  %v737_v58 = vsub.f32 %v705_v53, %v721_v37  ;;  %v616_v63 = vmul.f32 2.4433157e-05, %v488_v28  ;;  %v480_v4 = vmul.f32 1.5707964, %v432_v50 }
 0x167   : >> { %v520_v5 = vadd.f32 0.008332161, %v504_v62  ;;  %vm849_vm9 = vcmp.eq.s32.totalorder %v833_v59, 2  ;;  %v456_v61 = vand.u32 3, %v1210_v52  ;;  %vm929_vm10 = vcmp.eq.s32.totalorder %v913_v46, 2 }
 0x168   : >> { %v609_v1 = vadd.f32 %v593_v36, %v481_v55  ;;  %v753_v2 = vadd.f32 1.0, %v737_v58  ;;  %v632_v22 = vadd.f32 -0.0013887316, %v616_v63  ;;  %v680_v11 = vmul.f32 %v488_v28, %v488_v28 }
 0x169   : >> { %v536_v56 = vmul.f32 %v520_v5, %v488_v28  ;;  %v1226_v12 = vcvt.f32.s32 %v1225_v3  ;;  %v496_v55 = vmul.f32 %v480_v4, %v480_v4  ;;  %v712_v60 = vmul.f32 0.5, %v488_v28 }
 0x16a   : >> { %v801_v42 = vsel %vm785_vm8, %v753_v2, %v609_v1  ;;  %v817_v7 = vsel %vm785_vm8, %v609_v1, %v753_v2  ;;  %v648_v10 = vmul.f32 %v632_v22, %v488_v28  ;;  %v888_v8 = vadd.s32 1, %v456_v61 }
 0x16b   : >> { %v865_v6 = vsub.f32 0.0, %v801_v42  ;;  %v945_v9 = vsub.f32 0.0, %v817_v7  ;;  %v552_v15 = vadd.f32 -0.16666655, %v536_v56  ;;  %v512_v16 = vmul.f32 -0.00019515296, %v496_v55 }
 0x16c   : >> { %v664_v54 = vadd.f32 0.041666646, %v648_v10  ;;  %v624_v18 = vmul.f32 2.4433157e-05, %v496_v55  ;;  %v760_v20 = vand.u32 1, %v456_v61  ;;  %v464_v27 = vand.u32 3, %v1226_v12 }
 0x16d   : >> { %v881_v13 = vsel %vm849_vm9, %v865_v6, %v801_v42  ;;  %v961_v14 = vsel %vm929_vm10, %v945_v9, %v817_v7  ;;  %v568_v19 = vmul.f32 %v552_v15, %v488_v28  ;;  %v528_v21 = vadd.f32 0.008332161, %v512_v16 }
 0x16e   : >> { %979 = vst [vmem:[%s1612_s3 + $0x78] sm:$0xff] %v881_v13  ;;  %1146 = vst [vmem:[%s1612_s3 + $0x178] sm:$0xff] %v961_v14  ;;  %v696_v48 = vmul.f32 %v680_v11, %v664_v54  ;;  %v640_v23 = vadd.f32 -0.0013887316, %v624_v18  ;;  %v824_v31 = vand.u32 2, %v456_v61  ;;  %v904_v33 = vand.u32 2, %v888_v8 }
 0x16f   : >> { %v584_v24 = vmul.f32 %v568_v19, %v472_v49  ;;  %v544_v29 = vmul.f32 %v528_v21, %v496_v55  ;;  %vm776_vm11 = vcmp.eq.s32.totalorder %v760_v20, 1  ;;  %v688_v47 = vmul.f32 %v496_v55, %v496_v55 }
 0x170   : >> { %v728_v26 = vsub.f32 %v696_v48, %v712_v60  ;;  %v656_v30 = vmul.f32 %v640_v23, %v496_v55  ;;  %v720_v43 = vmul.f32 0.5, %v496_v55  ;;  %v896_v44 = vadd.s32 1, %v464_v27 }
 0x171   : >> { %v600_v34 = vadd.f32 %v584_v24, %v472_v49  ;;  %v560_v35 = vadd.f32 -0.16666655, %v544_v29  ;;  %vm840_vm12 = vcmp.eq.s32.totalorder %v824_v31, 2  ;;  %vm920_vm13 = vcmp.eq.s32.totalorder %v904_v33, 2 }
 0x172   : >> { %v744_v17 = vadd.f32 1.0, %v728_v26  ;;  %v672_v39 = vadd.f32 0.041666646, %v656_v30  ;;  %v768_v49 = vand.u32 1, %v464_v27  ;;  %v832_v36 = vand.u32 2, %v464_v27 }
 0x173   : >> { %v576_v45 = vmul.f32 %v560_v35, %v496_v55  ;;  %v912_v58 = vand.u32 2, %v896_v44 }
 0x174   : >> { %v792_v40 = vsel %vm776_vm11, %v744_v17, %v600_v34  ;;  %v808_v41 = vsel %vm776_vm11, %v600_v34, %v744_v17  ;;  %v704_v50 = vmul.f32 %v688_v47, %v672_v39  ;;  %vm784_vm14 = vcmp.eq.s32.totalorder %v768_v49, 1 }
 0x175   : >> { %v856_v25 = vsub.f32 0.0, %v792_v40  ;;  %v936_v37 = vsub.f32 0.0, %v808_v41  ;;  %v592_v51 = vmul.f32 %v576_v45, %v480_v4  ;;  %vm848_vm15 = vcmp.eq.s32.totalorder %v832_v36, 2 }
 0x176   : >> { %v736_v53 = vsub.f32 %v704_v50, %v720_v43  ;;  %vm928_vm0 = vcmp.eq.s32.totalorder %v912_v58, 2 }
 0x177   : >> { %v872_v57 = vsel %vm840_vm12, %v856_v25, %v792_v40  ;;  %v952_v32 = vsel %vm920_vm13, %v936_v37, %v808_v41  ;;  %v608_v38 = vadd.f32 %v592_v51, %v480_v4 }
 0x178   : >> { %970 = vst [vmem:[%s1612_s3 + $0x30] sm:$0xff] %v872_v57  ;;  %1137 = vst [vmem:[%s1612_s3 + $0x130] sm:$0xff] %v952_v32  ;;  %v752_v28 = vadd.f32 1.0, %v736_v53 }
 0x17a   : >> { %v800_v59 = vsel %vm784_vm14, %v752_v28, %v608_v38  ;;  %v816_v52 = vsel %vm784_vm14, %v608_v38, %v752_v28  ;;  %172 = sbr.rel (!%p170_p0) target bundleno = 29 (0x1d), region = 73 }
 0x17b   : >> { %v864_v46 = vsub.f32 0.0, %v800_v59  ;;  %v944_v62 = vsub.f32 0.0, %v816_v52 }
 0x17d   : >> { %v880_v63 = vsel %vm848_vm15, %v864_v46, %v800_v59  ;;  %v960_v1 = vsel %vm928_vm0, %v944_v62, %v816_v52 }
 0x17e   : >> { %978 = vst [vmem:[%s1612_s3 + $0x70] sm:$0xff] %v880_v63  ;;  %1145 = vst [vmem:[%s1612_s3 + $0x170] sm:$0xff] %v960_v1 }
 0x17f   : > { %1324 = shalt.err (!%p1321_p9)
}
 0x180   : > { %s1325_s28 = scalar_lea.hbm %s1985_s21, 8192  ;;  %s1329_s30 = scalar_lea.hbm %s2042_s2, 32768 }
 0x181   : > { %p1326_p10 = scmp.ne.s32.totalorder %s1985_s21, %s1325_s28  ;;  %p1330_p13 = scmp.lt.s32.totalorder %s1985_s21, %s2042_s2 }
 0x182   : > { %p1331_p0 = scmp.lt.s32.totalorder %s1329_s30, %s1325_s28 }
 0x183   : > { %p1327_p11 = pnand %p1326_p10, %p1483_p3 }
 0x184   : > { %p1332_p1 = por %p1331_p0, %p1330_p13 }
 0x185   : > { %p1328_p12 = pneg %p1327_p11 }
 0x187   : > { %p1333_p2 = pnand %p1332_p1, %p1328_p12 }
 0x189   : > { %1336 = shalt.err (!%p1333_p2)
}
 0x18a   : > { %s1414_s5 = smov 128   ;;  %s1415_s7 = smov 256  }
 0x18b   : > { %s1416_s8 = smov 8  }
 0x18c   : > { %1229 = dma.vmem_to_hbm [thread:$0]  (%p1483_p3), %s1980_s6, 8192, %s1985_s21, %s1989_s24, %s1414_s5, %s1415_s7, %s1416_s8  }
 0x18d PF: > { %p1235_p4 = scmp.ge.s32.totalorder %s1407_s16, 2  ;;  %s1027_s17 = sand.u32 1, %s1379_s9  }
 0x18e   : > { %s1028_s25 = scalar_lea.sflag [#allocation3], %s1027_s17 }
 0x18f   : > { %p1232_p5 = pnand %p1235_p4, %p1492_p8 }
 0x191   : > { %p1233_p6 = pneg %p1232_p5 }
 0x193   : > { %1374 = dma.done.wait (%p1233_p6), %s1028_s25, 8192  }
 0x194   : > { %1376 = vsyncadd (%p1233_p6), %s1028_s25, 4294959104  ;;  %s15_s16 = sadd.s32 1, %s1407_s16   ;;  %s2121_s9 = smov %s1383_s10 }
 0x195   : > { %p12_p7 = scmp.ge.s32.totalorder %s15_s16, 6   ;;  %s2122_s10 = smov %s1387_s11 }
 0x196   : > { %s2123_s11 = smov %s1501_s27  ;;  %s2124_s12 = smov %s1399_s14 }
 0x197   : > { %s2125_s13 = smov %s1403_s15  ;;  %s2126_s14 = smov %s2129_s19 }
 0x198   : > { %s2127_s15 = smov %s2133_s20  ;;  %14 = sbr.rel (!%p12_p7) target bundleno = 5 (0x5), region = 84 }
 0x19d   :  { %1033 = vsyncpa [#allocation3], 1 }
 0x19e   :  { %1035 = vsyncpa [#allocation3 + $0x1], 1 }

</bundles_post_ra>
